<compile_context>
chip_gen: v7x
topology: tpu7x:2x2x1
jax: 0.10.0
libtpu: 0.0.40
codegen_flags: <defaults>
</compile_context>

<pallas_src>
import functools

import jax
import jax.numpy as jnp
from jax.experimental import pallas as pl
from jax.experimental.pallas import tpu as pltpu


def dueling_mlp_kernel(
    x_ref,
    w1_ref, b1_ref,
    w2_ref, b2_ref,
    wh1_ref, bh1_ref,
    wh2_ref, bh2_ref,
    out_ref,
):
    cdt = w1_ref.dtype                       # compute dtype of MXU operands
    x = x_ref[...].astype(cdt)

    # --- MLPExtractor ---
    h = jnp.dot(x, w1_ref[...], preferred_element_type=jnp.float32) + b1_ref[...]
    h = jnp.maximum(h.astype(cdt), 0.0)                              # (TB, 256)
    h = jnp.dot(h, w2_ref[...], preferred_element_type=jnp.float32) + b2_ref[...]
    h = jnp.maximum(h.astype(cdt), 0.0)                              # (TB, F)

    # --- fused value + advantage heads (dueling combine folded into wh2/bh2) ---
    hc = jnp.dot(h, wh1_ref[...], preferred_element_type=jnp.float32) + bh1_ref[...]
    hc = jnp.maximum(hc.astype(cdt), 0.0)                            # (TB, 256)
    out = jnp.dot(hc, wh2_ref[...], preferred_element_type=jnp.float32) + bh2_ref[...]
    out_ref[...] = out.astype(out_ref.dtype)                         # (TB, out_cols)


def pack_params(p, n_actions, *, compute_dtype=jnp.bfloat16, out_pad=None):
    """Fold the two heads + dueling combine into one (256, n|out_pad) layer.

    out_pad=None  -> narrow (n_actions-wide) output: minimal HBM writeback.
    out_pad=128   -> lane-dense padded output (tiny-batch latency path).
    """
    f32 = jnp.float32
    n = n_actions

    wh1 = jnp.concatenate([p["wv1"], p["wa1"]], axis=1)              # (F, 256)
    bh1 = jnp.concatenate([p["bv1"], p["ba1"]], axis=1)              # (1, 256)

    center = jnp.eye(n, dtype=f32) - jnp.full((n, n), 1.0 / n, f32)  # I - 1/n
    wh2 = jnp.concatenate(
        [p["wv2"] @ jnp.ones((1, n), f32),                           # (128, n)
         p["wa2"] @ center],                                         # (128, n)
        axis=0)                                                      # (256, n)
    bh2 = p["bv2"] + p["ba2"] - jnp.mean(p["ba2"], axis=1, keepdims=True)

    if out_pad is not None and out_pad > n:                          # lane-dense out
        wh2 = jnp.pad(wh2, ((0, 0), (0, out_pad - n)))
        bh2 = jnp.pad(bh2, ((0, 0), (0, out_pad - n)))

    return {
        "w1": p["w1"].astype(compute_dtype), "b1": p["b1"].astype(f32),
        "w2": p["w2"].astype(compute_dtype), "b2": p["b2"].astype(f32),
        "wh1": wh1.astype(compute_dtype),    "bh1": bh1.astype(f32),
        "wh2": wh2.astype(compute_dtype),    "bh2": bh2.astype(f32),
    }


def _round_up(x, m):
    return ((x + m - 1) // m) * m


def _choose_batch_tile(B, block_b):
    """Large tiles (amortize per-step overhead); even grid length for v7x's 2 TCs."""
    if B <= block_b:
        return B                              # single tile, full batch resident
    k = -(-B // block_b)                      # cdiv
    if k % 2:                                 # even split across v7x TensorCores
        k += 1
    return min(_round_up(-(-B // k), 8), B)


def _vmem_budget_bytes(tb, obs_dim, out_cols, weight_bytes, out_itemsize):
    """Explicit VMEM budget so big tiles stay inside v7x's smaller VMEM."""
    x_tile = tb * obs_dim * 4 * 2             # double-buffered f32 input tile
    o_tile = tb * out_cols * out_itemsize * 2  # double-buffered output tile
    interm = tb * 256 * 4 * 4                  # generous f32 intermediate headroom
    est = x_tile + o_tile + 2 * weight_bytes + interm
    return int(min(max(2 * est, 16 * 2**20), 48 * 2**20))


@functools.partial(jax.jit, static_argnames=("n_actions", "block_b", "out_dtype"))
def dueling_mlp_forward(x, packed, *, n_actions, block_b=512, out_dtype=jnp.float32):
    """x: (B, obs_dim) f32.  packed: output of pack_params.  -> (B, n_actions)."""
    B, obs_dim = x.shape
    out_cols = packed["wh2"].shape[1]         # n_actions (narrow) or 128 (padded)
    tb = _choose_batch_tile(B, block_b)
    grid = (pl.cdiv(B, tb),)

    def x_map(i):
        return (i, 0)

    def w_map(i):                             # constant block -> weights stay resident
        return (0, 0)

    weight_keys = ("w1", "b1", "w2", "b2", "wh1", "bh1", "wh2", "bh2")
    weight_args = [packed[k] for k in weight_keys]
    weight_bytes = sum(a.size * a.dtype.itemsize for a in weight_args)

    in_specs = [pl.BlockSpec((tb, obs_dim), x_map)]
    in_specs += [pl.BlockSpec(a.shape, w_map) for a in weight_args]

    out = pl.pallas_call(
        dueling_mlp_kernel,
        out_shape=jax.ShapeDtypeStruct((B, out_cols), out_dtype),
        grid=grid,
        in_specs=in_specs,
        out_specs=pl.BlockSpec((tb, out_cols), x_map),
        compiler_params=pltpu.CompilerParams(
            dimension_semantics=("parallel",),   # shard batch across TCs on v7x
            vmem_limit_bytes=_vmem_budget_bytes(
                tb, obs_dim, out_cols, weight_bytes,
                jnp.dtype(out_dtype).itemsize)),
    )(x, *weight_args)
    return out[:, :n_actions]                 # no-op slice in the narrow path


def init_params(key, obs_dim, features_dim, n_actions):
    """Deterministic synthetic parameters. Weights stored (in, out); biases (1, out)."""
    def linear(k, fan_in, fan_out):
        kw, kb = jax.random.split(k)
        bound = 1.0 / (fan_in ** 0.5)
        w = jax.random.uniform(kw, (fan_in, fan_out), jnp.float32, -bound, bound)
        b = jax.random.uniform(kb, (1, fan_out), jnp.float32, -bound, bound)
        return w, b

    keys = jax.random.split(key, 6)
    p = {}
    p["w1"], p["b1"] = linear(keys[0], obs_dim, 256)
    p["w2"], p["b2"] = linear(keys[1], 256, features_dim)
    p["wv1"], p["bv1"] = linear(keys[2], features_dim, 128)
    p["wv2"], p["bv2"] = linear(keys[3], 128, 1)
    p["wa1"], p["ba1"] = linear(keys[4], features_dim, 128)
    p["wa2"], p["ba2"] = linear(keys[5], 128, n_actions)
    return p


def reference_forward(x, p, compute_dtype=jnp.float32):
    """Pure-JAX reference of the PyTorch forward (unfused heads)."""
    def mm(a, w):
        return jnp.dot(a.astype(compute_dtype), w.astype(compute_dtype),
                       preferred_element_type=jnp.float32)

    h = jnp.maximum(mm(x, p["w1"]) + p["b1"], 0.0)
    h = jnp.maximum(mm(h, p["w2"]) + p["b2"], 0.0)
    v = mm(jnp.maximum(mm(h, p["wv1"]) + p["bv1"], 0.0), p["wv2"]) + p["bv2"]
    a = mm(jnp.maximum(mm(h, p["wa1"]) + p["ba1"], 0.0), p["wa2"]) + p["ba2"]
    return v + (a - a.mean(axis=1, keepdims=True))


if __name__ == "__main__":
    OBS_DIM = 11          # "11개 상태 변수" per the docstring
    FEATURES_DIM = 128
    N_ACTIONS = 4

    key = jax.random.PRNGKey(0)
    kx1, kx2, kx3, kp = jax.random.split(key, 4)
    params = init_params(kp, OBS_DIM, FEATURES_DIM, N_ACTIONS)

    # --- 1) tiny-batch latency path: f32 weights, lane-dense padded (128) output ---
    x_small = jax.random.normal(kx1, (2, OBS_DIM), dtype=jnp.float32)
    packed_f32_pad = pack_params(params, N_ACTIONS,
                                 compute_dtype=jnp.float32, out_pad=128)
    out_small = jax.block_until_ready(
        dueling_mlp_forward(x_small, packed_f32_pad, n_actions=N_ACTIONS))
    ref_small = reference_forward(x_small, params)
    assert out_small.shape == (2, N_ACTIONS), out_small.shape
    assert jnp.allclose(out_small, ref_small, atol=1e-4, rtol=1e-4)

    # --- 2) single-tile throughput: f32 weights, narrow (n_actions-wide) output ---
    x_mid = jax.random.normal(kx2, (300, OBS_DIM), dtype=jnp.float32)
    packed_f32 = pack_params(params, N_ACTIONS, compute_dtype=jnp.float32)
    out_mid = jax.block_until_ready(
        dueling_mlp_forward(x_mid, packed_f32, n_actions=N_ACTIONS))
    ref_mid = reference_forward(x_mid, params)
    assert out_mid.shape == (300, N_ACTIONS), out_mid.shape
    assert jnp.allclose(out_mid, ref_mid, atol=1e-4, rtol=1e-4)

    # --- 3) multi-tile grid (even split for v7x, ragged final tile), f32 exactness ---
    x_big = jax.random.normal(kx3, (1200, OBS_DIM), dtype=jnp.float32)
    out_big = jax.block_until_ready(
        dueling_mlp_forward(x_big, packed_f32, n_actions=N_ACTIONS, block_b=512))
    ref_big = reference_forward(x_big, params)
    assert out_big.shape == (1200, N_ACTIONS), out_big.shape
    assert jnp.allclose(out_big, ref_big, atol=1e-4, rtol=1e-4)

    # --- 4) default throughput path: bf16 weights / f32 accumulation, narrow out ---
    packed_bf16 = pack_params(params, N_ACTIONS)      # bf16 is now the default pack
    out_bf16 = jax.block_until_ready(
        dueling_mlp_forward(x_big, packed_bf16, n_actions=N_ACTIONS))
    ref_bf16 = reference_forward(x_big, params, compute_dtype=jnp.bfloat16)
    assert out_bf16.shape == (1200, N_ACTIONS), out_bf16.shape
    assert jnp.allclose(out_bf16, ref_bf16, atol=1e-1, rtol=1e-1)

    print("KERNEL_OK")
</pallas_src>

<mosaic_0001>
module attributes {stable_mosaic.version = 11 : i64} {
  func.func @dueling_mlp_kernel(%arg0: i32, %arg1: memref<2x11xf32, #tpu.memory_space<vmem>>, %arg2: memref<11x256xf32, #tpu.memory_space<vmem>>, %arg3: memref<1x256xf32, #tpu.memory_space<vmem>>, %arg4: memref<256x128xf32, #tpu.memory_space<vmem>>, %arg5: memref<1x128xf32, #tpu.memory_space<vmem>>, %arg6: memref<128x256xf32, #tpu.memory_space<vmem>>, %arg7: memref<1x256xf32, #tpu.memory_space<vmem>>, %arg8: memref<256x128xf32, #tpu.memory_space<vmem>>, %arg9: memref<1x128xf32, #tpu.memory_space<vmem>>, %arg10: memref<2x128xf32, #tpu.memory_space<vmem>>) attributes {dimension_semantics = [#tpu.dimension_semantics<parallel>], iteration_bounds = array<i64: 1>, scalar_prefetch = 0 : i64, scratch_operands = 0 : i64, tpu.core_type = #tpu.core_type<tc>, window_params = [{transform_indices = @transform_0, window_bounds = array<i64: 2, 11>}, {pipeline_mode = #tpu.pipeline_mode<synchronous>, transform_indices = @transform_1, window_bounds = array<i64: 11, 256>}, {pipeline_mode = #tpu.pipeline_mode<synchronous>, transform_indices = @transform_2, window_bounds = array<i64: 1, 256>}, {pipeline_mode = #tpu.pipeline_mode<synchronous>, transform_indices = @transform_3, window_bounds = array<i64: 256, 128>}, {pipeline_mode = #tpu.pipeline_mode<synchronous>, transform_indices = @transform_4, window_bounds = array<i64: 1, 128>}, {pipeline_mode = #tpu.pipeline_mode<synchronous>, transform_indices = @transform_5, window_bounds = array<i64: 128, 256>}, {pipeline_mode = #tpu.pipeline_mode<synchronous>, transform_indices = @transform_6, window_bounds = array<i64: 1, 256>}, {pipeline_mode = #tpu.pipeline_mode<synchronous>, transform_indices = @transform_7, window_bounds = array<i64: 256, 128>}, {pipeline_mode = #tpu.pipeline_mode<synchronous>, transform_indices = @transform_8, window_bounds = array<i64: 1, 128>}, {transform_indices = @transform_9, window_bounds = array<i64: 2, 128>}]} {
    %c0 = arith.constant 0 : index
    %c0_0 = arith.constant 0 : index
    %0 = vector.load %arg1[%c0, %c0_0] : memref<2x11xf32, #tpu.memory_space<vmem>>, vector<2x11xf32>
    %c0_1 = arith.constant 0 : index
    %c0_2 = arith.constant 0 : index
    %1 = vector.load %arg2[%c0_1, %c0_2] : memref<11x256xf32, #tpu.memory_space<vmem>>, vector<11x256xf32>
    %cst = arith.constant dense<0.000000e+00> : vector<2x256xf32>
    %2 = tpu.matmul %0, %1, %cst {dimension_numbers = #tpu.dot_dimension_numbers<[1], [0], [0], [1], [0, 0, 1, 1], [], []>} : vector<2x11xf32>, vector<11x256xf32>, vector<2x256xf32> -> vector<2x256xf32>
    %c0_3 = arith.constant 0 : index
    %c0_4 = arith.constant 0 : index
    %3 = vector.load %arg3[%c0_3, %c0_4] : memref<1x256xf32, #tpu.memory_space<vmem>>, vector<1x256xf32>
    %4 = vector.broadcast %3 : vector<1x256xf32> to vector<2x256xf32>
    %5 = arith.addf %2, %4 : vector<2x256xf32>
    %cst_5 = arith.constant 0.000000e+00 : f32
    %6 = vector.broadcast %cst_5 : f32 to vector<2x256xf32>
    %7 = arith.maximumf %5, %6 : vector<2x256xf32>
    %c0_6 = arith.constant 0 : index
    %c0_7 = arith.constant 0 : index
    %8 = vector.load %arg4[%c0_6, %c0_7] : memref<256x128xf32, #tpu.memory_space<vmem>>, vector<256x128xf32>
    %cst_8 = arith.constant dense<0.000000e+00> : vector<2x128xf32>
    %9 = tpu.matmul %7, %8, %cst_8 {dimension_numbers = #tpu.dot_dimension_numbers<[1], [0], [0], [1], [0, 0, 1, 1], [], []>} : vector<2x256xf32>, vector<256x128xf32>, vector<2x128xf32> -> vector<2x128xf32>
    %c0_9 = arith.constant 0 : index
    %c0_10 = arith.constant 0 : index
    %10 = vector.load %arg5[%c0_9, %c0_10] : memref<1x128xf32, #tpu.memory_space<vmem>>, vector<1x128xf32>
    %11 = vector.broadcast %10 : vector<1x128xf32> to vector<2x128xf32>
    %12 = arith.addf %9, %11 : vector<2x128xf32>
    %cst_11 = arith.constant 0.000000e+00 : f32
    %13 = vector.broadcast %cst_11 : f32 to vector<2x128xf32>
    %14 = arith.maximumf %12, %13 : vector<2x128xf32>
    %c0_12 = arith.constant 0 : index
    %c0_13 = arith.constant 0 : index
    %15 = vector.load %arg6[%c0_12, %c0_13] : memref<128x256xf32, #tpu.memory_space<vmem>>, vector<128x256xf32>
    %cst_14 = arith.constant dense<0.000000e+00> : vector<2x256xf32>
    %16 = tpu.matmul %14, %15, %cst_14 {dimension_numbers = #tpu.dot_dimension_numbers<[1], [0], [0], [1], [0, 0, 1, 1], [], []>} : vector<2x128xf32>, vector<128x256xf32>, vector<2x256xf32> -> vector<2x256xf32>
    %c0_15 = arith.constant 0 : index
    %c0_16 = arith.constant 0 : index
    %17 = vector.load %arg7[%c0_15, %c0_16] : memref<1x256xf32, #tpu.memory_space<vmem>>, vector<1x256xf32>
    %18 = vector.broadcast %17 : vector<1x256xf32> to vector<2x256xf32>
    %19 = arith.addf %16, %18 : vector<2x256xf32>
    %cst_17 = arith.constant 0.000000e+00 : f32
    %20 = vector.broadcast %cst_17 : f32 to vector<2x256xf32>
    %21 = arith.maximumf %19, %20 : vector<2x256xf32>
    %c0_18 = arith.constant 0 : index
    %c0_19 = arith.constant 0 : index
    %22 = vector.load %arg8[%c0_18, %c0_19] : memref<256x128xf32, #tpu.memory_space<vmem>>, vector<256x128xf32>
    %cst_20 = arith.constant dense<0.000000e+00> : vector<2x128xf32>
    %23 = tpu.matmul %21, %22, %cst_20 {dimension_numbers = #tpu.dot_dimension_numbers<[1], [0], [0], [1], [0, 0, 1, 1], [], []>} : vector<2x256xf32>, vector<256x128xf32>, vector<2x128xf32> -> vector<2x128xf32>
    %c0_21 = arith.constant 0 : index
    %c0_22 = arith.constant 0 : index
    %24 = vector.load %arg9[%c0_21, %c0_22] : memref<1x128xf32, #tpu.memory_space<vmem>>, vector<1x128xf32>
    %25 = vector.broadcast %24 : vector<1x128xf32> to vector<2x128xf32>
    %26 = arith.addf %23, %25 : vector<2x128xf32>
    %c0_23 = arith.constant 0 : index
    %c0_24 = arith.constant 0 : index
    %27 = vector.load %arg10[%c0_23, %c0_24] : memref<2x128xf32, #tpu.memory_space<vmem>>, vector<2x128xf32>
    tpu.vector_store %arg10[%c0_23, %c0_24], %26 {strides = array<i32>} : memref<2x128xf32, #tpu.memory_space<vmem>>, vector<2x128xf32>,
    return
  }
  func.func @transform_0(%arg0: i32) -> (i32, i32) {
    %c0_i32 = arith.constant 0 : i32
    %c0_i32_0 = arith.constant 0 : i32
    return %arg0, %c0_i32 : i32, i32
  }
  func.func @transform_1(%arg0: i32) -> (i32, i32) {
    %c0_i32 = arith.constant 0 : i32
    %c0_i32_0 = arith.constant 0 : i32
    %c0_i32_1 = arith.constant 0 : i32
    return %c0_i32, %c0_i32_0 : i32, i32
  }
  func.func @transform_2(%arg0: i32) -> (i32, i32) {
    %c0_i32 = arith.constant 0 : i32
    %c0_i32_0 = arith.constant 0 : i32
    %c0_i32_1 = arith.constant 0 : i32
    return %c0_i32, %c0_i32_0 : i32, i32
  }
  func.func @transform_3(%arg0: i32) -> (i32, i32) {
    %c0_i32 = arith.constant 0 : i32
    %c0_i32_0 = arith.constant 0 : i32
    %c0_i32_1 = arith.constant 0 : i32
    return %c0_i32, %c0_i32_0 : i32, i32
  }
  func.func @transform_4(%arg0: i32) -> (i32, i32) {
    %c0_i32 = arith.constant 0 : i32
    %c0_i32_0 = arith.constant 0 : i32
    %c0_i32_1 = arith.constant 0 : i32
    return %c0_i32, %c0_i32_0 : i32, i32
  }
  func.func @transform_5(%arg0: i32) -> (i32, i32) {
    %c0_i32 = arith.constant 0 : i32
    %c0_i32_0 = arith.constant 0 : i32
    %c0_i32_1 = arith.constant 0 : i32
    return %c0_i32, %c0_i32_0 : i32, i32
  }
  func.func @transform_6(%arg0: i32) -> (i32, i32) {
    %c0_i32 = arith.constant 0 : i32
    %c0_i32_0 = arith.constant 0 : i32
    %c0_i32_1 = arith.constant 0 : i32
    return %c0_i32, %c0_i32_0 : i32, i32
  }
  func.func @transform_7(%arg0: i32) -> (i32, i32) {
    %c0_i32 = arith.constant 0 : i32
    %c0_i32_0 = arith.constant 0 : i32
    %c0_i32_1 = arith.constant 0 : i32
    return %c0_i32, %c0_i32_0 : i32, i32
  }
  func.func @transform_8(%arg0: i32) -> (i32, i32) {
    %c0_i32 = arith.constant 0 : i32
    %c0_i32_0 = arith.constant 0 : i32
    %c0_i32_1 = arith.constant 0 : i32
    return %c0_i32, %c0_i32_0 : i32, i32
  }
  func.func @transform_9(%arg0: i32) -> (i32, i32) {
    %c0_i32 = arith.constant 0 : i32
    %c0_i32_0 = arith.constant 0 : i32
    return %arg0, %c0_i32 : i32, i32
  }
}

</mosaic_0001>

<bundles_post_ra>
// kernel: dueling_mlp_forward.1
= control target key start
LH: loop header
LB: loop body
LE: loop exit
PB: predicated region body
PF: predicated region fallthrough
CT: control target
= control target key end

     0   :  { %14 = vsyncpa [#allocation3], 0  ;;  %s1049_s0 = inlined_call_operand.hbm [shape: f32[2,11], index: 0, kind: input, shape index: {}]   ;;  %s1050_s1 = inlined_call_operand.hbm [shape: f32[11,256], index: 1, kind: input, shape index: {}]   ;;  %s1051_s2 = inlined_call_operand.vmem [shape: f32[1,256], index: 2, kind: input, shape index: {}]   ;;  %s1052_s3 = inlined_call_operand.hbm [shape: f32[256,128], index: 3, kind: input, shape index: {}]   ;;  %s1053_s4 = inlined_call_operand.vmem [shape: f32[1,128], index: 4, kind: input, shape index: {}]   ;;  %s1054_s5 = inlined_call_operand.hbm [shape: f32[128,256], index: 5, kind: input, shape index: {}]   ;;  %s1055_s6 = inlined_call_operand.vmem [shape: f32[1,256], index: 6, kind: input, shape index: {}]   ;;  %s1056_s7 = inlined_call_operand.hbm [shape: f32[256,128], index: 7, kind: input, shape index: {}]   ;;  %s1057_s8 = inlined_call_operand.vmem [shape: f32[1,128], index: 8, kind: input, shape index: {}]   ;;  %s1058_s9 = inlined_call_operand.hbm [shape: f32[2,128], index: 9, kind: output, shape index: {}]  }
   0x1   :  { %15 = vsyncpa [#allocation6], 0 }
   0x2   :  { %16 = vsyncpa [#allocation9], 0 }
   0x3   :  { %17 = vsyncpa [#allocation4], 0  ;;  %s883_s30 = smov [#allocation5]   ;;  %s743_s13 = scalar_lea.hbm %s1050_s1, 512 }
   0x4   :  { %s33_s10 = sshll.u32 %s883_s30, 4  ;;  %p744_p0 = scmp.ne.s32.totalorder %s1050_s1, %s743_s13  ;;  %s34_s10 = int_to_ptr.vmem [resolvable:$true] %s33_s10 }
   0x5   :  { %p747_p1 = scmp.lt.u32.totalorder %s743_s13, %s1050_s1 }
   0x7   :  { %p749_p2 = pnand %p747_p1, %p744_p0 }
   0x9   :  { %752 = shalt.err (!%p749_p2)
}
   0xa   :  { %s753_s18 = scalar_lea.vmem %s34_s10, 512  ;;  %p758_p4 = scmp.lt.s32.totalorder %s34_s10, %s34_s10 }
   0xb   :  { %p754_p3 = scmp.ne.s32.totalorder %s34_s10, %s753_s18  ;;  %p759_p5 = scmp.lt.s32.totalorder %s753_s18, %s753_s18 }
   0xd   :  { %p760_p6 = por %p759_p5, %p758_p4 }
   0xf   :  { %p761_p7 = pnand %p760_p6, %p754_p3 }
  0x11   :  { %764 = shalt.err (!%p761_p7)
}
  0x12   :  { %s884_s19 = smov 256   ;;  %s885_s20 = smov 16  }
  0x13   :  { %39 = dma.hbm_to_vmem [thread:$0]  %s1050_s1, 512, %s34_s10, [#allocation6], %s884_s19, %s884_s19, %s885_s20  }
  0x14   :  { %s886_s23 = smov [#allocation8]   ;;  %s887_s25 = smov [#allocation2]  }
  0x15   :  { %s61_s24 = sshll.u32 %s886_s23, 4  ;;  %s24_s26 = sshll.u32 %s887_s25, 4  ;;  %s62_s24 = int_to_ptr.vmem [resolvable:$true] %s61_s24  ;;  %s25_s26 = int_to_ptr.vmem [resolvable:$true] %s24_s26 }
  0x16   :  { %s765_s29 = scalar_lea.hbm %s1054_s5, 4096 }
  0x17   :  { %p766_p8 = scmp.ne.s32.totalorder %s1054_s5, %s765_s29  ;;  %p769_p9 = scmp.lt.u32.totalorder %s765_s29, %s1054_s5 }
  0x19   :  { %p771_p10 = pnand %p769_p9, %p766_p8 }
  0x1b   :  { %774 = shalt.err (!%p771_p10)
}
  0x1c   :  { %s775_s1 = scalar_lea.vmem %s62_s24, 4096  ;;  %p780_p12 = scmp.lt.s32.totalorder %s62_s24, %s62_s24 }
  0x1d   :  { %p776_p11 = scmp.ne.s32.totalorder %s62_s24, %s775_s1  ;;  %p781_p13 = scmp.lt.s32.totalorder %s775_s1, %s775_s1 }
  0x1f   :  { %p782_p0 = por %p781_p13, %p780_p12 }
  0x21   :  { %p783_p1 = pnand %p782_p0, %p776_p11 }
  0x23   :  { %786 = shalt.err (!%p783_p1)
}
  0x24   :  { %67 = dma.hbm_to_vmem [thread:$0]  %s1054_s5, 4096, %s62_s24, [#allocation9], %s884_s19, %s884_s19, %s885_s20  }
  0x25   :  { %s787_s17 = scalar_lea.hbm %s1049_s0, 32 }
  0x26   :  { %p788_p2 = scmp.ne.s32.totalorder %s1049_s0, %s787_s17  ;;  %p791_p3 = scmp.lt.u32.totalorder %s787_s17, %s1049_s0 }
  0x28   :  { %p793_p4 = pnand %p791_p3, %p788_p2 }
  0x2a   :  { %796 = shalt.err (!%p793_p4)
}
  0x2b   :  { %s797_s25 = scalar_lea.vmem %s25_s26, 32  ;;  %p802_p6 = scmp.lt.s32.totalorder %s25_s26, %s25_s26 }
  0x2c   :  { %p798_p5 = scmp.ne.s32.totalorder %s25_s26, %s797_s25  ;;  %p803_p7 = scmp.lt.s32.totalorder %s797_s25, %s797_s25 }
  0x2e   :  { %p804_p8 = por %p803_p7, %p802_p6 }
  0x30   :  { %p805_p9 = pnand %p804_p8, %p798_p5 }
  0x32   :  { %808 = shalt.err (!%p805_p9)
}
  0x33   :  { %27 = dma.hbm_to_vmem [thread:$0]  %s1049_s0, 32, %s25_s26, [#allocation3]  }
  0x34   :  { %s888_s20 = smov [#allocation7]   ;;  %s809_s29 = scalar_lea.hbm %s1052_s3, 4096 }
  0x35   :  { %s47_s24 = sshll.u32 %s888_s20, 4  ;;  %p810_p10 = scmp.ne.s32.totalorder %s1052_s3, %s809_s29  ;;  %s48_s24 = int_to_ptr.vmem [resolvable:$true] %s47_s24 }
  0x36   :  { %p813_p11 = scmp.lt.u32.totalorder %s809_s29, %s1052_s3 }
  0x38   :  { %p815_p12 = pnand %p813_p11, %p810_p10 }
  0x3a   :  { %818 = shalt.err (!%p815_p12)
}
  0x3b   :  { %s819_s1 = scalar_lea.vmem %s48_s24, 4096  ;;  %p824_p0 = scmp.lt.s32.totalorder %s48_s24, %s48_s24 }
  0x3c   :  { %p820_p13 = scmp.ne.s32.totalorder %s48_s24, %s819_s1  ;;  %p825_p1 = scmp.lt.s32.totalorder %s819_s1, %s819_s1 }
  0x3e   :  { %p826_p2 = por %p825_p1, %p824_p0 }
  0x40   :  { %p827_p3 = pnand %p826_p2, %p820_p13 }
  0x42   :  { %830 = shalt.err (!%p827_p3)
}
  0x43   :  { %s889_s0 = smov 128   ;;  %s890_s26 = smov 8  }
  0x44   :  { %53 = dma.hbm_to_vmem [thread:$0]  %s1052_s3, 4096, %s48_s24, [#allocation6], %s889_s0, %s889_s0, %s890_s26  }
  0x45   :  { %s891_s15 = smov [#allocation10]   ;;  %s831_s21 = scalar_lea.hbm %s1056_s7, 4096 }
  0x46   :  { %s75_s16 = sshll.u32 %s891_s15, 4  ;;  %p832_p4 = scmp.ne.s32.totalorder %s1056_s7, %s831_s21  ;;  %s76_s16 = int_to_ptr.vmem [resolvable:$true] %s75_s16 }
  0x47   :  { %p835_p5 = scmp.lt.u32.totalorder %s831_s21, %s1056_s7 }
  0x49   :  { %p837_p6 = pnand %p835_p5, %p832_p4 }
  0x4b   :  { %840 = shalt.err (!%p837_p6)
}
  0x4c   :  { %s841_s19 = scalar_lea.vmem %s76_s16, 4096  ;;  %p846_p8 = scmp.lt.s32.totalorder %s76_s16, %s76_s16 }
  0x4d   :  { %p842_p7 = scmp.ne.s32.totalorder %s76_s16, %s841_s19  ;;  %p847_p9 = scmp.lt.s32.totalorder %s841_s19, %s841_s19 }
  0x4f   :  { %p848_p10 = por %p847_p9, %p846_p8 }
  0x51   :  { %p849_p11 = pnand %p848_p10, %p842_p7 }
  0x53   :  { %852 = shalt.err (!%p849_p11)
}
  0x54   :  { %81 = dma.hbm_to_vmem [thread:$0]  %s1056_s7, 4096, %s76_s16, [#allocation9], %s889_s0, %s889_s0, %s890_s26  }
  0x55   :  { %875 = dma.done.wait [#allocation3], 32  }
  0x56   :  { %876 = vsyncadd [#allocation3], 4294967264 }
  0x57   :  { %877 = dma.done.wait [#allocation6], 4608  }
  0x58   :  { %878 = vsyncadd [#allocation6], 4294962688 }
  0x59   :  { %879 = dma.done.wait [#allocation9], 8192  }
  0x5a   :  { %880 = vsyncadd [#allocation9], 4294959104  ;;  %v892_v0 = vmov 0.0   ;;  %vm120_vm0 = vcmask 1042432   ;;  %vm893_vm1 = vmmov 1   ;;  %v101_v2 = vld [vmem:[#allocation5 + $0x8] sm:$0xff] }
  0x5b   :  { %191 = vmatprep.mubr.f32.mxu0 %v892_v0  ;;  %vm1005_vm2 = vmpackc.low %vm120_vm0, %vm893_vm1  ;;  %v103_v3 = vld [vmem:[#allocation5 + $0x18] sm:$0x7]  ;;  %v100_v4 = vld [vmem:[#allocation5] sm:$0xff]  ;;  %vm116_vm3 = vcmask 89088  }
  0x5c   :  { %v629_v5 = vpack.c.bf16 %v103_v3, %v101_v2  ;;  %v102_v6 = vld [vmem:[#allocation5 + $0x10] sm:$0x7]  ;;  %v216_v7 = vld [vmem:[#allocation7 + $0x80] sm:$0xff]  ;;  %v99_v9 = vld [vmem:[#allocation2] sm:$0x3] }
  0x5d   :  { %v632_v8 = vpack.c.bf16 %v102_v6, %v100_v4  ;;  %v217_v10 = vld [vmem:[#allocation7 + $0x88] sm:$0xff]  ;;  %v200_v11 = vld [vmem:[#allocation7] sm:$0xff]  ;;  %v218_v15 = vld [vmem:[#allocation7 + $0x90] sm:$0xff] }
  0x5e   :  { %v201_v12 = vld [vmem:[#allocation7 + $0x8] sm:$0xff]  ;;  %631 = vmatprep.subr.msk.bf16.mxu0 %vm1005_vm2, %v629_v5  ;;  %v635_v13 = vpack.c.bf16 %v217_v10, %v216_v7  ;;  %v219_v16 = vld [vmem:[#allocation7 + $0x98] sm:$0xff]  ;;  %v202_v17 = vld [vmem:[#allocation7 + $0x10] sm:$0xff] }
  0x5f   :  { %v637_v14 = vpack.c.bf16 %v201_v12, %v200_v11  ;;  %634 = vmatpush1.bf16.msk.msra.mxu0 %vm1005_vm2, %v632_v8  ;;  %v639_v18 = vpack.c.bf16 %v219_v16, %v218_v15  ;;  %v203_v19 = vld [vmem:[#allocation7 + $0x18] sm:$0xff]  ;;  %v220_v20 = vld [vmem:[#allocation7 + $0xa0] sm:$0xff]  ;;  %v221_v21 = vld [vmem:[#allocation7 + $0xa8] sm:$0xff] }
  0x60   :  { %636 = vmatprep.subr.bf16.mxu1 %v635_v13  ;;  %v641_v22 = vpack.c.bf16 %v203_v19, %v202_v17  ;;  %v643_v23 = vpack.c.bf16 %v221_v21, %v220_v20  ;;  %v204_v24 = vld [vmem:[#allocation7 + $0x20] sm:$0xff]  ;;  %v205_v25 = vld [vmem:[#allocation7 + $0x28] sm:$0xff]  ;;  %v222_v26 = vld [vmem:[#allocation7 + $0xb0] sm:$0xff] }
  0x61   :  { %638 = vmatpush3.bf16.msra.mxu1 %v637_v14  ;;  %v223_v27 = vld [vmem:[#allocation7 + $0xb8] sm:$0xff]  ;;  %v645_v28 = vpack.c.bf16 %v205_v25, %v204_v24  ;;  %v206_v30 = vld [vmem:[#allocation7 + $0x30] sm:$0xff]  ;;  %v224_v32 = vld [vmem:[#allocation7 + $0xc0] sm:$0xff] }
  0x62   :  { %556 = vmatmul.mubr.msk.f32.vlgmr.msra.gmra.mrb[0].mxu0 %vm116_vm3, %v99_v9  ;;  %640 = vmatprep.subr.bf16.mxu1 %v639_v18  ;;  %v647_v29 = vpack.c.bf16 %v223_v27, %v222_v26  ;;  %v207_v31 = vld [vmem:[#allocation7 + $0x38] sm:$0xff]  ;;  %v225_v33 = vld [vmem:[#allocation7 + $0xc8] sm:$0xff]  ;;  %v208_v36 = vld [vmem:[#allocation7 + $0x40] sm:$0xff] }
  0x63   :  { %418 = vmatprep.mubr.f32.mxu0 %v892_v0  ;;  %v649_v34 = vpack.c.bf16 %v207_v31, %v206_v30  ;;  %v651_v35 = vpack.c.bf16 %v225_v33, %v224_v32  ;;  %v209_v37 = vld [vmem:[#allocation7 + $0x48] sm:$0xff]  ;;  %v226_v38 = vld [vmem:[#allocation7 + $0xd0] sm:$0xff]  ;;  %v227_v39 = vld [vmem:[#allocation7 + $0xd8] sm:$0xff] }
  0x64   :  { %v653_v40 = vpack.c.bf16 %v209_v37, %v208_v36  ;;  %v655_v41 = vpack.c.bf16 %v227_v39, %v226_v38  ;;  %v210_v42 = vld [vmem:[#allocation7 + $0x50] sm:$0xff]  ;;  %v211_v43 = vld [vmem:[#allocation7 + $0x58] sm:$0xff]  ;;  %v228_v44 = vld [vmem:[#allocation7 + $0xe0] sm:$0xff] }
  0x65   :  { %642 = vmatpush3.bf16.msra.mxu1 %v641_v22  ;;  %v229_v45 = vld [vmem:[#allocation7 + $0xe8] sm:$0xff]  ;;  %v657_v46 = vpack.c.bf16 %v211_v43, %v210_v42  ;;  %v212_v48 = vld [vmem:[#allocation7 + $0x60] sm:$0xff]  ;;  %v230_v51 = vld [vmem:[#allocation7 + $0xf0] sm:$0xff] }
  0x66   :  { %644 = vmatprep.subr.bf16.mxu1 %v643_v23  ;;  %v659_v47 = vpack.c.bf16 %v229_v45, %v228_v44  ;;  %v213_v49 = vld [vmem:[#allocation7 + $0x68] sm:$0xff]  ;;  %v231_v52 = vld [vmem:[#allocation7 + $0xf8] sm:$0xff]  ;;  %v214_v54 = vld [vmem:[#allocation7 + $0x70] sm:$0xff] }
  0x67   :  { %v661_v50 = vpack.c.bf16 %v213_v49, %v212_v48  ;;  %v663_v53 = vpack.c.bf16 %v231_v52, %v230_v51  ;;  %v215_v55 = vld [vmem:[#allocation7 + $0x78] sm:$0xff]  ;;  %v311_v57 = vld [vmem:[#allocation8 + $0x8] sm:$0xff]  ;;  %v310_v59 = vld [vmem:[#allocation8] sm:$0xff] }
  0x68   :  { %v665_v56 = vpack.c.bf16 %v215_v55, %v214_v54  ;;  %v313_v58 = vld [vmem:[#allocation8 + $0x18] sm:$0xff]  ;;  %v312_v61 = vld [vmem:[#allocation8 + $0x10] sm:$0xff]  ;;  %v315_v62 = vld [vmem:[#allocation8 + $0x28] sm:$0xff] }
  0x69   :  { %646 = vmatpush3.bf16.msra.mxu1 %v645_v28  ;;  %v667_v60 = vpack.c.bf16 %v313_v58, %v311_v57  ;;  %v317_v63 = vld [vmem:[#allocation8 + $0x38] sm:$0xff]  ;;  %v669_v0 = vpack.c.bf16 %v312_v61, %v310_v59  ;;  %v314_v2 = vld [vmem:[#allocation8 + $0x20] sm:$0xff]  ;;  %v316_v3 = vld [vmem:[#allocation8 + $0x30] sm:$0xff] }
  0x6a   :  { %648 = vmatprep.subr.bf16.mxu1 %v647_v29  ;;  %v671_v1 = vpack.c.bf16 %v317_v63, %v315_v62  ;;  %v319_v4 = vld [vmem:[#allocation8 + $0x48] sm:$0xff]  ;;  %v321_v5 = vld [vmem:[#allocation8 + $0x58] sm:$0xff]  ;;  %v673_v6 = vpack.c.bf16 %v316_v3, %v314_v2  ;;  %v318_v8 = vld [vmem:[#allocation8 + $0x40] sm:$0xff]  ;;  %v106_v29 = vlaneseq }
  0x6b   :  { %668 = vmatprep.subr.bf16.mxu0 %v667_v60  ;;  %v675_v7 = vpack.c.bf16 %v321_v5, %v319_v4  ;;  %v320_v9 = vld [vmem:[#allocation8 + $0x50] sm:$0xff]  ;;  %v323_v10 = vld [vmem:[#allocation8 + $0x68] sm:$0xff]  ;;  %v325_v11 = vld [vmem:[#allocation8 + $0x78] sm:$0xff] }
  0x6c   :  { %670 = vmatpush1.bf16.msra.mxu0 %v669_v0  ;;  %v677_v12 = vpack.c.bf16 %v320_v9, %v318_v8  ;;  %v679_v13 = vpack.c.bf16 %v325_v11, %v323_v10  ;;  %v322_v14 = vld [vmem:[#allocation8 + $0x60] sm:$0xff]  ;;  %v324_v15 = vld [vmem:[#allocation8 + $0x70] sm:$0xff]  ;;  %v327_v16 = vld [vmem:[#allocation8 + $0x88] sm:$0xff]  ;;  %v1013_v30 = vshrl.u32 %v106_v29, 7 }
  0x6d   :  { %650 = vmatpush3.bf16.msra.mxu1 %v649_v34  ;;  %672 = vmatprep.subr.bf16.mxu0 %v671_v1  ;;  %v329_v17 = vld [vmem:[#allocation8 + $0x98] sm:$0xff]  ;;  %v681_v18 = vpack.c.bf16 %v324_v15, %v322_v14  ;;  %v326_v20 = vld [vmem:[#allocation8 + $0x80] sm:$0xff]  ;;  %v328_v21 = vld [vmem:[#allocation8 + $0x90] sm:$0xff] }
  0x6e   :  { %652 = vmatprep.subr.bf16.mxu1 %v651_v35  ;;  %v683_v19 = vpack.c.bf16 %v329_v17, %v327_v16  ;;  %v331_v22 = vld [vmem:[#allocation8 + $0xa8] sm:$0xff]  ;;  %v333_v23 = vld [vmem:[#allocation8 + $0xb8] sm:$0xff]  ;;  %v685_v24 = vpack.c.bf16 %v328_v21, %v326_v20  ;;  %v330_v26 = vld [vmem:[#allocation8 + $0xa0] sm:$0xff]  ;;  %v108_v31 = vsub.s32 0, %v1013_v30  ;;  %v112_v33 = vsub.s32 1, %v1013_v30 }
  0x6f   :  { %v687_v25 = vpack.c.bf16 %v333_v23, %v331_v22  ;;  %v332_v27 = vld [vmem:[#allocation8 + $0xb0] sm:$0xff]  ;;  %v104_v32 = vld [vmem:[%s1051_s2] sm:$0x3]  ;;  %v335_v42 = vld [vmem:[#allocation8 + $0xc8] sm:$0xff] }
  0x70   :  { %674 = vmatpush1.bf16.msra.mxu0 %v673_v6  ;;  %v689_v28 = vpack.c.bf16 %v332_v27, %v330_v26  ;;  %v109_v34 = vrot.slane %v104_v32, %v108_v31  ;;  %v113_v35 = vrot.slane %v104_v32, %v112_v33  ;;  %v337_v43 = vld [vmem:[#allocation8 + $0xd8] sm:$0xff]  ;;  %v334_v45 = vld [vmem:[#allocation8 + $0xc0] sm:$0xff]  ;;  %v339_v48 = vld [vmem:[#allocation8 + $0xe8] sm:$0xff] }
  0x71   :  { %654 = vmatpush3.bf16.msra.mxu1 %v653_v40  ;;  %676 = vmatprep.subr.bf16.mxu0 %v675_v7  ;;  %v691_v44 = vpack.c.bf16 %v337_v43, %v335_v42  ;;  %v341_v49 = vld [vmem:[#allocation8 + $0xf8] sm:$0xff]  ;;  %v338_v51 = vld [vmem:[#allocation8 + $0xe0] sm:$0xff]  ;;  %v340_v52 = vld [vmem:[#allocation8 + $0xf0] sm:$0xff] }
  0x72   :  { %656 = vmatprep.subr.bf16.mxu1 %v655_v41  ;;  %v443_v54 = vld [vmem:[#allocation10 + $0x80] sm:$0xff]  ;;  %v444_v55 = vld [vmem:[#allocation10 + $0x88] sm:$0xff]  ;;  %v445_v59 = vld [vmem:[#allocation10 + $0x90] sm:$0xff] }
  0x73   :  { %v699_v57 = vpack.c.bf16 %v444_v55, %v443_v54  ;;  %v428_v58 = vld [vmem:[#allocation10 + $0x8] sm:$0xff]  ;;  %v446_v60 = vld [vmem:[#allocation10 + $0x98] sm:$0xff]  ;;  %v429_v63 = vld [vmem:[#allocation10 + $0x10] sm:$0xff] }
  0x74   :  { %678 = vmatpush1.bf16.msra.mxu0 %v677_v12  ;;  %v703_v62 = vpack.c.bf16 %v446_v60, %v445_v59  ;;  %v430_v0 = vld [vmem:[#allocation10 + $0x18] sm:$0xff]  ;;  %v447_v1 = vld [vmem:[#allocation10 + $0xa0] sm:$0xff]  ;;  %v448_v2 = vld [vmem:[#allocation10 + $0xa8] sm:$0xff] }
  0x75   :  { %658 = vmatpush3.bf16.msra.mxu1 %v657_v46  ;;  %680 = vmatprep.subr.bf16.mxu0 %v679_v13  ;;  %v336_v46 = vld [vmem:[#allocation8 + $0xd0] sm:$0xff]  ;;  %v705_v3 = vpack.c.bf16 %v430_v0, %v429_v63  ;;  %v707_v4 = vpack.c.bf16 %v448_v2, %v447_v1  ;;  %v431_v5 = vld [vmem:[#allocation10 + $0x20] sm:$0xff]  ;;  %v432_v6 = vld [vmem:[#allocation10 + $0x28] sm:$0xff] }
  0x76   :  { %660 = vmatprep.subr.bf16.mxu1 %v659_v47  ;;  %v693_v47 = vpack.c.bf16 %v336_v46, %v334_v45  ;;  %v449_v7 = vld [vmem:[#allocation10 + $0xb0] sm:$0xff]  ;;  %v450_v8 = vld [vmem:[#allocation10 + $0xb8] sm:$0xff]  ;;  %v709_v9 = vpack.c.bf16 %v432_v6, %v431_v5  ;;  %v451_v13 = vld [vmem:[#allocation10 + $0xc0] sm:$0xff] }
  0x77   :  { %v711_v10 = vpack.c.bf16 %v450_v8, %v449_v7  ;;  %v433_v11 = vld [vmem:[#allocation10 + $0x30] sm:$0xff]  ;;  %v434_v12 = vld [vmem:[#allocation10 + $0x38] sm:$0xff]  ;;  %v452_v14 = vld [vmem:[#allocation10 + $0xc8] sm:$0xff] }
  0x78   :  { %682 = vmatpush1.bf16.msra.mxu0 %v681_v18  ;;  %v713_v15 = vpack.c.bf16 %v434_v12, %v433_v11  ;;  %v715_v16 = vpack.c.bf16 %v452_v14, %v451_v13  ;;  %v435_v17 = vld [vmem:[#allocation10 + $0x40] sm:$0xff]  ;;  %v436_v18 = vld [vmem:[#allocation10 + $0x48] sm:$0xff]  ;;  %v454_v20 = vld [vmem:[#allocation10 + $0xd8] sm:$0xff] }
  0x79   :  { %662 = vmatpush3.bf16.msra.mxu1 %v661_v50  ;;  %684 = vmatprep.subr.bf16.mxu0 %v683_v19  ;;  %v695_v50 = vpack.c.bf16 %v341_v49, %v339_v48  ;;  %v453_v19 = vld [vmem:[#allocation10 + $0xd0] sm:$0xff]  ;;  %v717_v21 = vpack.c.bf16 %v436_v18, %v435_v17  ;;  %v456_v26 = vld [vmem:[#allocation10 + $0xe8] sm:$0xff]  ;;  %v557_v32 = vld [vmem:[%s1053_s4] ss:$0 sm:$0xff] }
  0x7a   :  { %664 = vmatprep.subr.bf16.mxu1 %v663_v53  ;;  %v697_v53 = vpack.c.bf16 %v340_v52, %v338_v51  ;;  %v719_v22 = vpack.c.bf16 %v454_v20, %v453_v19  ;;  %v437_v23 = vld [vmem:[#allocation10 + $0x50] sm:$0xff]  ;;  %v458_v42 = vld [vmem:[#allocation10 + $0xf8] sm:$0xff] }
  0x7b   :  { %v442_v45 = vld [vmem:[#allocation10 + $0x78] sm:$0xff] }
  0x7c   :  { %686 = vmatpush1.bf16.msra.mxu0 %v685_v24  ;;  %v438_v24 = vld [vmem:[#allocation10 + $0x58] sm:$0xff] }
  0x7d   :  { %666 = vmatpush3.bf16.msra.mxu1 %v665_v56  ;;  %688 = vmatprep.subr.bf16.mxu0 %v687_v25  ;;  %v427_v56 = vld [vmem:[#allocation10] sm:$0xff]  ;;  %v721_v27 = vpack.c.bf16 %v438_v24, %v437_v23 }
  0x7e   :  { %v701_v61 = vpack.c.bf16 %v428_v58, %v427_v56  ;;  %700 = vmatprep.subr.bf16.mxu1 %v699_v57  ;;  %v455_v25 = vld [vmem:[#allocation10 + $0xe0] sm:$0xff]  ;;  %v558_v57 = vld [vmem:[%s1057_s8] ss:$0 sm:$0xff] }
  0x80   :  { %690 = vmatpush1.bf16.msra.mxu0 %v689_v28  ;;  %v723_v28 = vpack.c.bf16 %v456_v26, %v455_v25 }
  0x81   :  { %692 = vmatprep.subr.bf16.mxu0 %v691_v44  ;;  %v441_v44 = vld [vmem:[#allocation10 + $0x70] sm:$0xff] }
  0x82   :  { %v729_v46 = vpack.c.bf16 %v442_v45, %v441_v44 }
  0x84   :  { %694 = vmatpush1.bf16.msra.mxu0 %v693_v47  ;;  %v342_v47 = vld [vmem:[%s1055_s6] sm:$0x3]  ;;  %s894_s6 = smov [#allocation11]  }
  0x85   :  { %696 = vmatprep.subr.bf16.mxu0 %v695_v50  ;;  %v347_v48 = vrot.slane %v342_v47, %v108_v31  ;;  %v351_v49 = vrot.slane %v342_v47, %v112_v33  ;;  %s543_s11 = sshll.u32 %s894_s6, 4  ;;  %s544_s11 = int_to_ptr.vmem [resolvable:$true] %s543_s11 }
  0x86   :  { %s853_s12 = scalar_lea.vmem %s544_s11, 32  ;;  %p858_p13 = scmp.lt.s32.totalorder %s544_s11, %s544_s11 }
  0x87   :  { %p854_p12 = scmp.ne.s32.totalorder %s544_s11, %s853_s12  ;;  %p859_p0 = scmp.lt.s32.totalorder %s853_s12, %s853_s12 }
  0x88   :  { %698 = vmatpush1.bf16.msra.mxu0 %v697_v53 }
  0x89   :  { %p860_p1 = por %p859_p0, %p858_p13 }
  0x8b   :  { %p861_p2 = pnand %p860_p1, %p854_p12 }
 0x135   :  { %v193_v36 = vpop.f32.mrb[0].mxu0 }
 0x136   :  { %v194_v37 = vadd.f32 %v193_v36, %v109_v34  ;;  %v195_v38 = vpop.f32.mrb[1].mxu0 }
 0x137   :  { %v196_v39 = vadd.f32 %v195_v38, %v113_v35  ;;  %v439_v38 = vld [vmem:[#allocation10 + $0x60] sm:$0xff] }
 0x138   :  { %v198_v41 = vmax.f32 %v194_v37, 0.0 }
 0x139   :  { %v199_v40 = vmax.f32 %v196_v39, 0.0  ;;  %v440_v39 = vld [vmem:[#allocation10 + $0x68] sm:$0xff] }
 0x13b   :  { %303 = vmatprep.mubr.f32.mxu1 %v199_v40  ;;  %v725_v40 = vpack.c.bf16 %v440_v39, %v439_v38 }
 0x13c   :  { %304 = vmatmul.mubr.f32.vlgmr.msra.gmra.mrb[0].mxu1 %v198_v41  ;;  %v457_v41 = vld [vmem:[#allocation10 + $0xf0] sm:$0xff] }
 0x13d   :  { %702 = vmatpush3.bf16.msra.mxu1 %v701_v61  ;;  %v727_v43 = vpack.c.bf16 %v458_v42, %v457_v41 }
 0x13e   :  { %704 = vmatprep.subr.bf16.mxu1 %v703_v62 }
 0x141   :  { %706 = vmatpush3.bf16.msra.mxu1 %v705_v3 }
 0x142   :  { %708 = vmatprep.subr.bf16.mxu1 %v707_v4 }
 0x145   :  { %710 = vmatpush3.bf16.msra.mxu1 %v709_v9 }
 0x146   :  { %712 = vmatprep.subr.bf16.mxu1 %v711_v10 }
 0x149   :  { %714 = vmatpush3.bf16.msra.mxu1 %v713_v15 }
 0x14a   :  { %716 = vmatprep.subr.bf16.mxu1 %v715_v16 }
 0x14d   :  { %718 = vmatpush3.bf16.msra.mxu1 %v717_v21 }
 0x14e   :  { %720 = vmatprep.subr.bf16.mxu1 %v719_v22 }
 0x151   :  { %722 = vmatpush3.bf16.msra.mxu1 %v721_v27 }
 0x152   :  { %724 = vmatprep.subr.bf16.mxu1 %v723_v28 }
 0x155   :  { %726 = vmatpush3.bf16.msra.mxu1 %v725_v40 }
 0x156   :  { %728 = vmatprep.subr.bf16.mxu1 %v727_v43 }
 0x159   :  { %730 = vmatpush3.bf16.msra.mxu1 %v729_v46 }
 0x20f   :  { %v591_v29 = vpop.f32.mrb[0].mxu1 }
 0x210   :  { %v592_v34 = vpop.f32.mrb[1].mxu1 }
 0x211   :  { %v593_v35 = vadd.f32 %v592_v34, %v591_v29 }
 0x213   :  { %v306_v36 = vadd.f32 %v593_v35, %v557_v32 }
 0x215   :  { %v309_v37 = vmax.f32 %v306_v36, 0.0 }
 0x217   :  { %419 = vmatmul.mubr.f32.vlgmr.msra.gmra.mrb[2].mxu0 %v309_v37 }
 0x2ea   :  { %v420_v50 = vpop.f32.mrb[2].mxu0 }
 0x2eb   :  { %v421_v51 = vadd.f32 %v420_v50, %v347_v48  ;;  %v422_v52 = vpop.f32.mrb[3].mxu0 }
 0x2ec   :  { %v423_v53 = vadd.f32 %v422_v52, %v351_v49 }
 0x2ed   :  { %v425_v55 = vmax.f32 %v421_v51, 0.0 }
 0x2ee   :  { %v426_v54 = vmax.f32 %v423_v53, 0.0 }
 0x2f0   :  { %530 = vmatprep.mubr.f32.mxu1 %v426_v54 }
 0x2f1   :  { %531 = vmatmul.mubr.f32.vlgmr.msra.gmra.mrb[2].mxu1 %v425_v55 }
 0x3c4   :  { %v626_v56 = vpop.f32.mrb[2].mxu1 }
 0x3c5   :  { %v627_v58 = vpop.f32.mrb[3].mxu1 }
 0x3c6   :  { %v628_v31 = vadd.f32 %v627_v58, %v626_v56 }
 0x3c8   :  { %v533_v59 = vadd.f32 %v628_v31, %v558_v57 }
 0x3ca   :  { %536 = vst [vmem:[#allocation11] sm:$0x3] %v533_v59 }
 0x3cb   :  { %864 = shalt.err (!%p861_p2)
}
 0x3cc   :  { %s865_s0 = scalar_lea.hbm %s1058_s9, 32 }
 0x3cd   :  { %p866_p3 = scmp.ne.s32.totalorder %s1058_s9, %s865_s0  ;;  %p869_p4 = scmp.lt.u32.totalorder %s865_s0, %s1058_s9 }
 0x3cf   :  { %p871_p5 = pnand %p869_p4, %p866_p3 }
 0x3d1   :  { %874 = shalt.err (!%p871_p5)
}
 0x3d2   :  { %546 = dma.vmem_to_hbm [thread:$0]  %s544_s11, 32, %s1058_s9, [#allocation4]  }
 0x3d3   :  { %881 = dma.done.wait [#allocation4], 32  }
 0x3d4   :  { %882 = vsyncadd [#allocation4], 4294967264 }
 0x3d5   :  { %550 = vsyncpa [#allocation3], 1 }
 0x3d6   :  { %551 = vsyncpa [#allocation6], 1 }
 0x3d7   :  { %552 = vsyncpa [#allocation9], 1 }
 0x3d8   :  { %553 = vsyncpa [#allocation4], 1 }

</bundles_post_ra>
